<compile_context>
chip_gen: v7x
topology: tpu7x:2x2x1
jax: 0.10.0
libtpu: 0.0.40
codegen_flags: <defaults>
</compile_context>

<pallas_src>
import functools

import jax
import jax.numpy as jnp
from jax import lax
from jax.experimental import pallas as pl
from jax.experimental.pallas import tpu as pltpu


def _round_up(x, m):
    return (x + m - 1) // m * m


def _vmem_limit_bytes():
    """Pick a VMEM budget that fits the current TPU generation."""
    cap = 128 * 1024 * 1024
    try:
        info = pltpu.get_tpu_info()
        for attr in ("vmem_capacity_bytes", "vmem_size_bytes", "vmem_bytes"):
            v = getattr(info, attr, None)
            if v:
                cap = int(v)
                break
    except Exception:
        pass
    # Leave headroom for Mosaic internal scratch.  -> ~96 MiB on v5e/v6e
    # (128 MiB VMEM), ~56 MiB on v7x (64 MiB VMEM).
    return max(32 * 1024 * 1024, min(cap - 8 * 1024 * 1024, 96 * 1024 * 1024))


def _resident_spec(shape, index_map):
    """Constant-index (grid-invariant) block: single-buffer it if supported."""
    try:
        return pl.BlockSpec(shape, index_map, pipeline_mode=pl.Buffered(1))
    except (TypeError, AttributeError):
        return pl.BlockSpec(shape, index_map)


# ----------------------------------------------------------------------------
# Fused kernel: one (token-tile, vocab-tile) grid step.
# ----------------------------------------------------------------------------
def fused_mlm_head_kernel(x_ref, w1_ref, b1_ref, gamma_ref, beta_ref,
                          w2_ref, b2_ref, o_ref, h_ref, *, eps, stage1_chunk):
    j = pl.program_id(1)
    tm = h_ref.shape[0]
    n_chunks = tm // stage1_chunk

    def transform(x):
        # bf16 x bf16 on the MXU, f32 accumulation.
        h = jnp.dot(x, w1_ref[...], preferred_element_type=jnp.float32)
        h = h + b1_ref[...].astype(jnp.float32)
        # Exact (erf-based) GELU, matching torch.nn.GELU default (f32 math).
        h = 0.5 * h * (1.0 + lax.erf(h * jnp.float32(0.7071067811865476)))
        # LayerNorm over the full embedding axis (f32 statistics).
        mean = jnp.mean(h, axis=-1, keepdims=True)
        var = jnp.mean(jnp.square(h - mean), axis=-1, keepdims=True)
        hn = (h - mean) * lax.rsqrt(var + jnp.float32(eps))
        out = (hn * gamma_ref[...].astype(jnp.float32)
               + beta_ref[...].astype(jnp.float32))
        return out.astype(h_ref.dtype)

    # Stage 1: dense -> GELU -> LayerNorm, once per token tile (vocab step 0),
    # chunked over the token rows to bound f32 live ranges at large tm.
    @pl.when(j == 0)
    def _():
        if n_chunks == 1:
            h_ref[...] = transform(x_ref[...])
        else:
            def body(r, carry):
                start = pl.multiple_of(r * stage1_chunk, stage1_chunk)
                rows = pl.ds(start, stage1_chunk)
                h_ref[rows, :] = transform(x_ref[rows, :])
                return carry
            lax.fori_loop(0, n_chunks, body, 0, unroll=True)

    # Stage 2: classifier for this vocab tile: (tm, E) @ (E, tn) -> (tm, tn).
    logits = jnp.dot(h_ref[...], w2_ref[...],
                     preferred_element_type=jnp.float32)
    o_ref[...] = (logits + b2_ref[...].astype(jnp.float32)).astype(o_ref.dtype)


# ----------------------------------------------------------------------------
# Wrapper
# ----------------------------------------------------------------------------
def bert_mlm_head(bert_output, params, *, layer_norm_epsilon=1e-5,
                  tm=1024, tn=2048, out_dtype=jnp.float32):
    """bert_output: [B, S, H] -> logits [B, S, V] (out_dtype, default f32)."""
    B, S, H = bert_output.shape
    w1 = params["w1"].astype(jnp.bfloat16)
    w2 = params["w2"].astype(jnp.bfloat16)
    b1 = params["b1"].astype(jnp.float32).reshape(1, -1)
    gamma = params["gamma"].astype(jnp.float32).reshape(1, -1)
    beta = params["beta"].astype(jnp.float32).reshape(1, -1)
    b2 = params["b2"].astype(jnp.float32).reshape(1, -1)
    E = w1.shape[1]
    V = w2.shape[1]
    M = B * S

    # Tile sizes: big MXU-friendly tiles, clamped to the problem size.
    # Token tiles rounded to 16 (bf16 sublane packing), vocab tiles to 128
    # (lane-dense stores; multiple of 256 at the default for v6e/v7x MXU).
    # No padding anywhere: grid uses cdiv and Pallas masks the ragged last
    # block along each axis (per-row / per-column math, so padded garbage
    # never contaminates valid outputs).
    tm = max(16, min(_round_up(tm, 16), _round_up(M, 16)))
    tn = max(128, min(_round_up(tn, 128), _round_up(V, 128)))
    stage1_chunk = 256 if tm % 256 == 0 else tm
    grid = (pl.cdiv(M, tm), pl.cdiv(V, tn))

    x2d = bert_output.reshape(M, H).astype(jnp.bfloat16)

    fused = pl.pallas_call(
        functools.partial(fused_mlm_head_kernel, eps=layer_norm_epsilon,
                          stage1_chunk=stage1_chunk),
        out_shape=jax.ShapeDtypeStruct((M, V), out_dtype),
        grid_spec=pltpu.PrefetchScalarGridSpec(
            num_scalar_prefetch=0,
            grid=grid,
            in_specs=[
                pl.BlockSpec((tm, H), lambda i, j: (i, 0)),       # x token tile
                _resident_spec((H, E), lambda i, j: (0, 0)),      # W1 (resident)
                _resident_spec((1, E), lambda i, j: (0, 0)),      # b1
                _resident_spec((1, E), lambda i, j: (0, 0)),      # gamma
                _resident_spec((1, E), lambda i, j: (0, 0)),      # beta
                pl.BlockSpec((E, tn), lambda i, j: (0, j)),       # W2 vocab tile
                pl.BlockSpec((1, tn), lambda i, j: (0, j)),       # b2 vocab tile
            ],
            out_specs=pl.BlockSpec((tm, tn), lambda i, j: (i, j)),
            scratch_shapes=[pltpu.VMEM((tm, E), jnp.bfloat16)],   # resident h
        ),
        compiler_params=pltpu.CompilerParams(
            # Token axis parallel (megacore on v7x); vocab axis must stay
            # "arbitrary" and innermost: h_ref is written only at j == 0.
            dimension_semantics=("parallel", "arbitrary"),
            vmem_limit_bytes=_vmem_limit_bytes(),
        ),
    )
    logits = fused(x2d, w1, b1, gamma, beta, w2, b2)
    return logits.reshape(B, S, V)


def init_params(key, hidden_size, embedding_size, vocab_size):
    """Deterministic xavier_uniform weights; LN weight=1, bias=0 (per module)."""
    k1, k2, k3, k4 = jax.random.split(key, 4)

    def xavier(k, fan_in, fan_out):
        limit = jnp.sqrt(6.0 / (fan_in + fan_out))
        return jax.random.uniform(k, (fan_in, fan_out), jnp.float32,
                                  minval=-limit, maxval=limit)

    return {
        "w1": xavier(k1, hidden_size, embedding_size),
        "b1": 0.02 * jax.random.normal(k3, (embedding_size,), jnp.float32),
        "gamma": jnp.ones((embedding_size,), jnp.float32),
        "beta": jnp.zeros((embedding_size,), jnp.float32),
        "w2": xavier(k2, embedding_size, vocab_size),
        "b2": 0.02 * jax.random.normal(k4, (vocab_size,), jnp.float32),
    }


def reference(bert_output, params, eps=1e-5):
    """Pure-JAX reference with matching bf16 operand precision."""
    f32 = jnp.float32
    x = bert_output.astype(jnp.bfloat16).astype(f32)
    w1 = params["w1"].astype(jnp.bfloat16).astype(f32)
    w2 = params["w2"].astype(jnp.bfloat16).astype(f32)
    h = x @ w1 + params["b1"]
    h = 0.5 * h * (1.0 + lax.erf(h * jnp.float32(0.7071067811865476)))
    mean = jnp.mean(h, axis=-1, keepdims=True)
    var = jnp.mean(jnp.square(h - mean), axis=-1, keepdims=True)
    h = (h - mean) * lax.rsqrt(var + eps) * params["gamma"] + params["beta"]
    h = h.astype(jnp.bfloat16).astype(f32)
    return h @ w2 + params["b2"]


if __name__ == "__main__":
    B, S, H = 2, 8, 32          # batch, seq, hidden
    E, V = 32, 512              # embedding_size, vocab_size (small demo)

    key = jax.random.PRNGKey(0)
    kx, kp = jax.random.split(key)
    x = jax.random.normal(kx, (B, S, H), jnp.float32)
    params = init_params(kp, H, E, V)

    logits = jax.block_until_ready(bert_mlm_head(x, params))
    ref = reference(x, params)

    assert logits.shape == (B, S, V)
    assert jnp.allclose(logits, ref, atol=2e-2, rtol=2e-2), \
        float(jnp.max(jnp.abs(logits - ref)))

    print("KERNEL_OK")
</pallas_src>

<mosaic_0001>
module attributes {stable_mosaic.version = 11 : i64} {
  func.func @fused_mlm_head_kernel(%arg0: i32, %arg1: i32, %arg2: memref<16x32xbf16, #tpu.memory_space<vmem>>, %arg3: memref<32x32xbf16, #tpu.memory_space<vmem>>, %arg4: memref<1x32xf32, #tpu.memory_space<vmem>>, %arg5: memref<1x32xf32, #tpu.memory_space<vmem>>, %arg6: memref<1x32xf32, #tpu.memory_space<vmem>>, %arg7: memref<32x512xbf16, #tpu.memory_space<vmem>>, %arg8: memref<1x512xf32, #tpu.memory_space<vmem>>, %arg9: memref<16x512xf32, #tpu.memory_space<vmem>>, %arg10: memref<16x32xbf16, #tpu.memory_space<vmem>>) attributes {dimension_semantics = [#tpu.dimension_semantics<parallel>, #tpu.dimension_semantics<arbitrary>], iteration_bounds = array<i64: 1, 1>, scalar_prefetch = 0 : i64, scratch_operands = 1 : i64, tpu.core_type = #tpu.core_type<tc>, window_params = [{transform_indices = @transform_0, window_bounds = array<i64: 16, 32>}, {pipeline_mode = #tpu.pipeline_mode<synchronous>, transform_indices = @transform_1, window_bounds = array<i64: 32, 32>}, {pipeline_mode = #tpu.pipeline_mode<synchronous>, transform_indices = @transform_2, window_bounds = array<i64: 1, 32>}, {pipeline_mode = #tpu.pipeline_mode<synchronous>, transform_indices = @transform_3, window_bounds = array<i64: 1, 32>}, {pipeline_mode = #tpu.pipeline_mode<synchronous>, transform_indices = @transform_4, window_bounds = array<i64: 1, 32>}, {transform_indices = @transform_5, window_bounds = array<i64: 32, 512>}, {transform_indices = @transform_6, window_bounds = array<i64: 1, 512>}, {transform_indices = @transform_7, window_bounds = array<i64: 16, 512>}]} {
    %c0_i32 = arith.constant 0 : i32
    %0 = arith.cmpi eq, %arg1, %c0_i32 : i32
    %1 = arith.extui %0 : i1 to i32
    %c0_i32_0 = arith.constant 0 : i32
    %2 = arith.cmpi ne, %1, %c0_i32_0 : i32
    scf.if %2 {
      %c0_8 = arith.constant 0 : index
      %c0_9 = arith.constant 0 : index
      %10 = vector.load %arg2[%c0_8, %c0_9] : memref<16x32xbf16, #tpu.memory_space<vmem>>, vector<16x32xbf16>
      %c0_10 = arith.constant 0 : index
      %c0_11 = arith.constant 0 : index
      %11 = vector.load %arg3[%c0_10, %c0_11] : memref<32x32xbf16, #tpu.memory_space<vmem>>, vector<32x32xbf16>
      %cst_12 = arith.constant dense<0.000000e+00> : vector<16x32xf32>
      %12 = tpu.matmul %10, %11, %cst_12 {dimension_numbers = #tpu.dot_dimension_numbers<[1], [0], [0], [1], [0, 0, 1, 1], [], []>} : vector<16x32xbf16>, vector<32x32xbf16>, vector<16x32xf32> -> vector<16x32xf32>
      %c0_13 = arith.constant 0 : index
      %c0_14 = arith.constant 0 : index
      %13 = vector.load %arg4[%c0_13, %c0_14] : memref<1x32xf32, #tpu.memory_space<vmem>>, vector<1x32xf32>
      %14 = vector.broadcast %13 : vector<1x32xf32> to vector<16x32xf32>
      %15 = arith.addf %12, %14 : vector<16x32xf32>
      %cst_15 = arith.constant 5.000000e-01 : f32
      %16 = vector.broadcast %cst_15 : f32 to vector<16x32xf32>
      %17 = arith.mulf %16, %15 : vector<16x32xf32>
      %cst_16 = arith.constant 0.707106769 : f32
      %18 = vector.broadcast %cst_16 : f32 to vector<16x32xf32>
      %19 = arith.mulf %15, %18 : vector<16x32xf32>
      %20 = math.erf %19 : vector<16x32xf32>
      %cst_17 = arith.constant 1.000000e+00 : f32
      %21 = vector.broadcast %cst_17 : f32 to vector<16x32xf32>
      %22 = arith.addf %21, %20 : vector<16x32xf32>
      %23 = arith.mulf %17, %22 : vector<16x32xf32>
      %cst_18 = arith.constant dense<0.000000e+00> : vector<16xf32>
      %24 = vector.multi_reduction <add>, %23, %cst_18 [1] : vector<16x32xf32> to vector<16xf32>
      %25 = vector.shape_cast %24 : vector<16xf32> to vector<16x1xf32>
      %cst_19 = arith.constant 3.200000e+01 : f32
      %26 = vector.broadcast %cst_19 : f32 to vector<16x1xf32>
      %27 = arith.divf %25, %26 : vector<16x1xf32>
      %28 = vector.broadcast %27 : vector<16x1xf32> to vector<16x32xf32>
      %29 = arith.subf %23, %28 : vector<16x32xf32>
      %30 = arith.mulf %29, %29 : vector<16x32xf32>
      %cst_20 = arith.constant dense<0.000000e+00> : vector<16xf32>
      %31 = vector.multi_reduction <add>, %30, %cst_20 [1] : vector<16x32xf32> to vector<16xf32>
      %32 = vector.shape_cast %31 : vector<16xf32> to vector<16x1xf32>
      %cst_21 = arith.constant 3.200000e+01 : f32
      %33 = vector.broadcast %cst_21 : f32 to vector<16x1xf32>
      %34 = arith.divf %32, %33 : vector<16x1xf32>
      %35 = vector.broadcast %27 : vector<16x1xf32> to vector<16x32xf32>
      %36 = arith.subf %23, %35 : vector<16x32xf32>
      %cst_22 = arith.constant 9.99999974E-6 : f32
      %37 = vector.broadcast %cst_22 : f32 to vector<16x1xf32>
      %38 = arith.addf %34, %37 : vector<16x1xf32>
      %39 = math.rsqrt %38 : vector<16x1xf32>
      %40 = vector.broadcast %39 : vector<16x1xf32> to vector<16x32xf32>
      %41 = arith.mulf %36, %40 : vector<16x32xf32>
      %c0_23 = arith.constant 0 : index
      %c0_24 = arith.constant 0 : index
      %42 = vector.load %arg5[%c0_23, %c0_24] : memref<1x32xf32, #tpu.memory_space<vmem>>, vector<1x32xf32>
      %43 = vector.broadcast %42 : vector<1x32xf32> to vector<16x32xf32>
      %44 = arith.mulf %41, %43 : vector<16x32xf32>
      %c0_25 = arith.constant 0 : index
      %c0_26 = arith.constant 0 : index
      %45 = vector.load %arg6[%c0_25, %c0_26] : memref<1x32xf32, #tpu.memory_space<vmem>>, vector<1x32xf32>
      %46 = vector.broadcast %45 : vector<1x32xf32> to vector<16x32xf32>
      %47 = arith.addf %44, %46 : vector<16x32xf32>
      %48 = arith.truncf %47 : vector<16x32xf32> to vector<16x32xbf16>
      %c0_27 = arith.constant 0 : index
      %c0_28 = arith.constant 0 : index
      %49 = vector.load %arg10[%c0_27, %c0_28] : memref<16x32xbf16, #tpu.memory_space<vmem>>, vector<16x32xbf16>
      tpu.vector_store %arg10[%c0_27, %c0_28], %48 {strides = array<i32>} : memref<16x32xbf16, #tpu.memory_space<vmem>>, vector<16x32xbf16>,
    } else {
    }
    %c0 = arith.constant 0 : index
    %c0_1 = arith.constant 0 : index
    %3 = vector.load %arg10[%c0, %c0_1] : memref<16x32xbf16, #tpu.memory_space<vmem>>, vector<16x32xbf16>
    %c0_2 = arith.constant 0 : index
    %c0_3 = arith.constant 0 : index
    %4 = vector.load %arg7[%c0_2, %c0_3] : memref<32x512xbf16, #tpu.memory_space<vmem>>, vector<32x512xbf16>
    %cst = arith.constant dense<0.000000e+00> : vector<16x512xf32>
    %5 = tpu.matmul %3, %4, %cst {dimension_numbers = #tpu.dot_dimension_numbers<[1], [0], [0], [1], [0, 0, 1, 1], [], []>} : vector<16x32xbf16>, vector<32x512xbf16>, vector<16x512xf32> -> vector<16x512xf32>
    %c0_4 = arith.constant 0 : index
    %c0_5 = arith.constant 0 : index
    %6 = vector.load %arg8[%c0_4, %c0_5] : memref<1x512xf32, #tpu.memory_space<vmem>>, vector<1x512xf32>
    %7 = vector.broadcast %6 : vector<1x512xf32> to vector<16x512xf32>
    %8 = arith.addf %5, %7 : vector<16x512xf32>
    %c0_6 = arith.constant 0 : index
    %c0_7 = arith.constant 0 : index
    %9 = vector.load %arg9[%c0_6, %c0_7] : memref<16x512xf32, #tpu.memory_space<vmem>>, vector<16x512xf32>
    tpu.vector_store %arg9[%c0_6, %c0_7], %8 {strides = array<i32>} : memref<16x512xf32, #tpu.memory_space<vmem>>, vector<16x512xf32>,
    return
  }
  func.func @transform_0(%arg0: i32, %arg1: i32) -> (i32, i32) {
    %c0_i32 = arith.constant 0 : i32
    %c0_i32_0 = arith.constant 0 : i32
    return %arg0, %c0_i32 : i32, i32
  }
  func.func @transform_1(%arg0: i32, %arg1: i32) -> (i32, i32) {
    %c0_i32 = arith.constant 0 : i32
    %c0_i32_0 = arith.constant 0 : i32
    %c0_i32_1 = arith.constant 0 : i32
    return %c0_i32, %c0_i32_0 : i32, i32
  }
  func.func @transform_2(%arg0: i32, %arg1: i32) -> (i32, i32) {
    %c0_i32 = arith.constant 0 : i32
    %c0_i32_0 = arith.constant 0 : i32
    %c0_i32_1 = arith.constant 0 : i32
    return %c0_i32, %c0_i32_0 : i32, i32
  }
  func.func @transform_3(%arg0: i32, %arg1: i32) -> (i32, i32) {
    %c0_i32 = arith.constant 0 : i32
    %c0_i32_0 = arith.constant 0 : i32
    %c0_i32_1 = arith.constant 0 : i32
    return %c0_i32, %c0_i32_0 : i32, i32
  }
  func.func @transform_4(%arg0: i32, %arg1: i32) -> (i32, i32) {
    %c0_i32 = arith.constant 0 : i32
    %c0_i32_0 = arith.constant 0 : i32
    %c0_i32_1 = arith.constant 0 : i32
    return %c0_i32, %c0_i32_0 : i32, i32
  }
  func.func @transform_5(%arg0: i32, %arg1: i32) -> (i32, i32) {
    %c0_i32 = arith.constant 0 : i32
    %c0_i32_0 = arith.constant 0 : i32
    return %c0_i32, %arg1 : i32, i32
  }
  func.func @transform_6(%arg0: i32, %arg1: i32) -> (i32, i32) {
    %c0_i32 = arith.constant 0 : i32
    %c0_i32_0 = arith.constant 0 : i32
    return %c0_i32, %arg1 : i32, i32
  }
  func.func @transform_7(%arg0: i32, %arg1: i32) -> (i32, i32) {
    %c0_i32 = arith.constant 0 : i32
    return %arg0, %arg1 : i32, i32
  }
}

</mosaic_0001>

<bundles_post_ra>
// kernel: tpu_custom_call.1
= control target key start
LH: loop header
LB: loop body
LE: loop exit
PB: predicated region body
PF: predicated region fallthrough
CT: control target
= control target key end

     0   :  { %12 = vsyncpa [#allocation4], 0  ;;  %s869_s0 = inlined_call_operand.hbm [shape: bf16[16,32], index: 0, kind: input, shape index: {}]   ;;  %s870_s1 = inlined_call_operand.hbm [shape: bf16[32,32], index: 1, kind: input, shape index: {}]   ;;  %s871_s2 = inlined_call_operand.hbm [shape: f32[1,32], index: 2, kind: input, shape index: {}]   ;;  %s872_s3 = inlined_call_operand.hbm [shape: f32[1,32], index: 3, kind: input, shape index: {}]   ;;  %s873_s4 = inlined_call_operand.hbm [shape: f32[1,32], index: 4, kind: input, shape index: {}]   ;;  %s874_s5 = inlined_call_operand.hbm [shape: bf16[32,512], index: 5, kind: input, shape index: {}]   ;;  %s875_s6 = inlined_call_operand.hbm [shape: f32[1,512], index: 6, kind: input, shape index: {}]   ;;  %s876_s7 = inlined_call_operand.hbm [shape: f32[16,512], index: 7, kind: output, shape index: {}]  }
   0x1   :  { %13 = vsyncpa [#allocation7], 0 }
   0x2   :  { %14 = vsyncpa [#allocation10], 0 }
   0x3   :  { %15 = vsyncpa [#allocation13], 0 }
   0x4   :  { %16 = vsyncpa [#allocation5], 0  ;;  %s694_s24 = smov [#allocation6]   ;;  %s695_s26 = smov [#allocation9]  }
   0x5   :  { %s34_s25 = sshll.u32 %s694_s24, 4  ;;  %s57_s27 = sshll.u32 %s695_s26, 4  ;;  %s35_s25 = int_to_ptr.vmem [resolvable:$true] %s34_s25  ;;  %s751_s27 = int_to_ptr.vmem [resolvable:$true] %s57_s27 }
   0x6   :  { %s508_s30 = scalar_lea.hbm %s870_s1, 256 }
   0x7   :  { %p509_p0 = scmp.ne.s32.totalorder %s870_s1, %s508_s30  ;;  %p512_p1 = scmp.lt.u32.totalorder %s508_s30, %s870_s1 }
   0x9   :  { %p514_p2 = pnand %p512_p1, %p509_p0 }
   0xb   :  { %517 = shalt.err (!%p514_p2)
}
   0xc   :  { %s518_s12 = scalar_lea.vmem %s35_s25, 256  ;;  %p523_p4 = scmp.lt.s32.totalorder %s35_s25, %s35_s25 }
   0xd   :  { %p519_p3 = scmp.ne.s32.totalorder %s35_s25, %s518_s12  ;;  %p524_p5 = scmp.lt.s32.totalorder %s518_s12, %s518_s12 }
   0xf   :  { %p525_p6 = por %p524_p5, %p523_p4 }
  0x11   :  { %p526_p7 = pnand %p525_p6, %p519_p3 }
  0x13   :  { %529 = shalt.err (!%p526_p7)
}
  0x14   :  { %s696_s13 = smov 64   ;;  %s697_s14 = smov 4  }
  0x15   :  { %40 = dma.hbm_to_vmem [thread:$0]  %s870_s1, 256, %s35_s25, [#allocation7], %s696_s13, %s696_s13, %s697_s14  }
  0x16   :  { %s530_s19 = scalar_lea.hbm %s872_s3, 16 }
  0x17   :  { %p531_p8 = scmp.ne.s32.totalorder %s872_s3, %s530_s19  ;;  %p534_p9 = scmp.lt.u32.totalorder %s530_s19, %s872_s3 }
  0x19   :  { %p536_p10 = pnand %p534_p9, %p531_p8 }
  0x1b   :  { %539 = shalt.err (!%p536_p10)
}
  0x1c   :  { %s540_s24 = scalar_lea.vmem %s751_s27, 16  ;;  %s544_s1 = scalar_lea.vmem %s751_s27, 32 }
  0x1d   :  { %p541_p11 = scmp.ne.s32.totalorder %s751_s27, %s540_s24  ;;  %p545_p12 = scmp.lt.s32.totalorder %s751_s27, %s751_s27 }
  0x1e   :  { %p546_p13 = scmp.lt.s32.totalorder %s544_s1, %s540_s24 }
  0x20   :  { %p547_p0 = por %p546_p13, %p545_p12 }
  0x22   :  { %p548_p1 = pnand %p547_p0, %p541_p11 }
  0x24   :  { %551 = shalt.err (!%p548_p1)
}
  0x25   :  { %60 = dma.hbm_to_vmem [thread:$0]  %s872_s3, 16, %s751_s27, [#allocation10]  }
  0x26   :  { %s698_s28 = smov [#allocation12]   ;;  %s552_s9 = scalar_lea.hbm %s874_s5, 1024 }
  0x27   :  { %s76_s29 = sshll.u32 %s698_s28, 4  ;;  %p553_p2 = scmp.ne.s32.totalorder %s874_s5, %s552_s9  ;;  %s77_s29 = int_to_ptr.vmem [resolvable:$true] %s76_s29 }
  0x28   :  { %p556_p3 = scmp.lt.u32.totalorder %s552_s9, %s874_s5 }
  0x2a   :  { %p558_p4 = pnand %p556_p3, %p553_p2 }
  0x2c   :  { %561 = shalt.err (!%p558_p4)
}
  0x2d   :  { %s562_s16 = scalar_lea.vmem %s77_s29, 1024  ;;  %p567_p6 = scmp.lt.s32.totalorder %s77_s29, %s77_s29 }
  0x2e   :  { %p563_p5 = scmp.ne.s32.totalorder %s77_s29, %s562_s16  ;;  %p568_p7 = scmp.lt.s32.totalorder %s562_s16, %s562_s16 }
  0x30   :  { %p569_p8 = por %p568_p7, %p567_p6 }
  0x32   :  { %p570_p9 = pnand %p569_p8, %p563_p5 }
  0x34   :  { %573 = shalt.err (!%p570_p9)
}
  0x35   :  { %s699_s3 = smov 256   ;;  %s700_s27 = smov 16  }
  0x36   :  { %82 = dma.hbm_to_vmem [thread:$0]  %s874_s5, 1024, %s77_s29, [#allocation13], %s699_s3, %s699_s3, %s700_s27  }
  0x37   :  { %s701_s19 = smov [#allocation3]   ;;  %s702_s21 = smov [#allocation8]  }
  0x38   :  { %s22_s20 = sshll.u32 %s701_s19, 4  ;;  %s47_s22 = sshll.u32 %s702_s21, 4  ;;  %s23_s20 = int_to_ptr.vmem [resolvable:$true] %s22_s20  ;;  %s48_s22 = int_to_ptr.vmem [resolvable:$true] %s47_s22 }
  0x39   :  { %s574_s1 = scalar_lea.hbm %s869_s0, 128 }
  0x3a   :  { %p575_p10 = scmp.ne.s32.totalorder %s869_s0, %s574_s1  ;;  %p578_p11 = scmp.lt.u32.totalorder %s574_s1, %s869_s0 }
  0x3c   :  { %p580_p12 = pnand %p578_p11, %p575_p10 }
  0x3e   :  { %583 = shalt.err (!%p580_p12)
}
  0x3f   :  { %s584_s5 = scalar_lea.vmem %s23_s20, 128  ;;  %p589_p0 = scmp.lt.s32.totalorder %s23_s20, %s23_s20 }
  0x40   :  { %p585_p13 = scmp.ne.s32.totalorder %s23_s20, %s584_s5  ;;  %p590_p1 = scmp.lt.s32.totalorder %s584_s5, %s584_s5 }
  0x42   :  { %p591_p2 = por %p590_p1, %p589_p0 }
  0x44   :  { %p592_p3 = pnand %p591_p2, %p585_p13 }
  0x46   :  { %595 = shalt.err (!%p592_p3)
}
  0x47   :  { %28 = dma.hbm_to_vmem [thread:$0]  %s869_s0, 128, %s23_s20, [#allocation4], %s696_s13, %s696_s13, %s697_s14  }
  0x48   :  { %s596_s11 = scalar_lea.hbm %s871_s2, 16 }
  0x49   :  { %p597_p4 = scmp.ne.s32.totalorder %s871_s2, %s596_s11  ;;  %p600_p5 = scmp.lt.u32.totalorder %s596_s11, %s871_s2 }
  0x4b   :  { %p602_p6 = pnand %p600_p5, %p597_p4 }
  0x4d   :  { %605 = shalt.err (!%p602_p6)
}
  0x4e   :  { %s606_s27 = scalar_lea.vmem %s48_s22, 16  ;;  %s610_s17 = scalar_lea.vmem %s48_s22, 32 }
  0x4f   :  { %p607_p7 = scmp.ne.s32.totalorder %s48_s22, %s606_s27  ;;  %p611_p8 = scmp.lt.s32.totalorder %s48_s22, %s48_s22 }
  0x50   :  { %p612_p9 = scmp.lt.s32.totalorder %s610_s17, %s606_s27 }
  0x52   :  { %p613_p10 = por %p612_p9, %p611_p8 }
  0x54   :  { %p614_p11 = pnand %p613_p10, %p607_p7 }
  0x56   :  { %617 = shalt.err (!%p614_p11)
}
  0x57   :  { %50 = dma.hbm_to_vmem [thread:$0]  %s871_s2, 16, %s48_s22, [#allocation7]  }
  0x58   :  { %s703_s14 = smov [#allocation11]   ;;  %s704_s19 = smov [#allocation14]  }
  0x59   :  { %s67_s18 = sshll.u32 %s703_s14, 4  ;;  %s89_s20 = sshll.u32 %s704_s19, 4  ;;  %s68_s18 = int_to_ptr.vmem [resolvable:$true] %s67_s18  ;;  %s90_s20 = int_to_ptr.vmem [resolvable:$true] %s89_s20 }
  0x5a   :  { %s618_s24 = scalar_lea.hbm %s873_s4, 16 }
  0x5b   :  { %p619_p12 = scmp.ne.s32.totalorder %s873_s4, %s618_s24  ;;  %p622_p13 = scmp.lt.u32.totalorder %s618_s24, %s873_s4 }
  0x5d   :  { %p624_p0 = pnand %p622_p13, %p619_p12 }
  0x5f   :  { %627 = shalt.err (!%p624_p0)
}
  0x60   :  { %s628_s2 = scalar_lea.vmem %s68_s18, 16  ;;  %s632_s22 = scalar_lea.vmem %s68_s18, 32 }
  0x61   :  { %p629_p1 = scmp.ne.s32.totalorder %s68_s18, %s628_s2  ;;  %p633_p2 = scmp.lt.s32.totalorder %s68_s18, %s68_s18 }
  0x62   :  { %p634_p3 = scmp.lt.s32.totalorder %s632_s22, %s628_s2 }
  0x64   :  { %p635_p4 = por %p634_p3, %p633_p2 }
  0x66   :  { %p636_p5 = pnand %p635_p4, %p629_p1 }
  0x68   :  { %639 = shalt.err (!%p636_p5)
}
  0x69   :  { %70 = dma.hbm_to_vmem [thread:$0]  %s873_s4, 16, %s68_s18, [#allocation10]  }
  0x6a   :  { %s640_s9 = scalar_lea.hbm %s875_s6, 64 }
  0x6b   :  { %p641_p6 = scmp.ne.s32.totalorder %s875_s6, %s640_s9  ;;  %p644_p7 = scmp.lt.u32.totalorder %s640_s9, %s875_s6 }
  0x6d   :  { %p646_p8 = pnand %p644_p7, %p641_p6 }
  0x6f   :  { %649 = shalt.err (!%p646_p8)
}
  0x70   :  { %s650_s16 = scalar_lea.vmem %s90_s20, 64  ;;  %p655_p10 = scmp.lt.s32.totalorder %s90_s20, %s90_s20 }
  0x71   :  { %p651_p9 = scmp.ne.s32.totalorder %s90_s20, %s650_s16  ;;  %p656_p11 = scmp.lt.s32.totalorder %s650_s16, %s650_s16 }
  0x73   :  { %p657_p12 = por %p656_p11, %p655_p10 }
  0x75   :  { %p658_p13 = pnand %p657_p12, %p651_p9 }
  0x77   :  { %661 = shalt.err (!%p658_p13)
}
  0x78   :  { %92 = dma.hbm_to_vmem [thread:$0]  %s875_s6, 64, %s90_s20, [#allocation13]  }
  0x79   :  { %684 = dma.done.wait [#allocation4], 128  }
  0x7a   :  { %685 = vsyncadd [#allocation4], 4294967168 }
  0x7b   :  { %686 = dma.done.wait [#allocation7], 272  }
  0x7c   :  { %687 = vsyncadd [#allocation7], 4294967024 }
  0x7d   :  { %688 = dma.done.wait [#allocation10], 32  }
  0x7e   :  { %689 = vsyncadd [#allocation10], 4294967264 }
  0x7f   :  { %690 = dma.done.wait [#allocation13], 1088  }
  0x80   :  { %691 = vsyncadd [#allocation13], 4294966208  ;;  %v705_v0 = vmov 0.0   ;;  %vm706_vm0 = vmmov 0   ;;  %v485_v1 = vld [vmem:[#allocation6] sm:$0xff]   ;;  %v486_v2 = vld [vmem:[#allocation6 + $0x8] sm:$0xff]   ;;  %v262_v60 = vlaneseq }
  0x81   :  { %460 = vmatprep.subr.bf16.mxu0 %v705_v0  ;;  %464 = vmatprep.mubr.msk.bf16.mxu0 %vm706_vm0, %v705_v0  ;;  %v487_v3 = vld [vmem:[#allocation3] sm:$0xff]   ;;  %vm149_vm1 = vcmask 261120   ;;  %v440_v4 = vld [vmem:[#allocation8] ss:$0 sm:$0xff]  ;;  %v490_v33 = vld [vmem:[#allocation12 + $0xc] ss:$16 sps:$4 sm:$0xff]  }
  0x82   :  { %461 = vmatpush3.bf16.msra.mxu0 %v485_v1  ;;  %v491_v34 = vld [vmem:[#allocation12 + $0x4] ss:$16 sps:$4 sm:$0xff]   ;;  %v488_v35 = vld [vmem:[#allocation12 + $0x8] ss:$16 sps:$4 sm:$0xff]   ;;  %v493_v36 = vld [vmem:[#allocation12] ss:$16 sps:$4 sm:$0xff]  }
  0x83   :  { %462 = vmatprep.subr.bf16.mxu0 %v705_v0  ;;  %326 = vmatprep.subr.bf16.mxu1 %v491_v34  ;;  %v496_v37 = vld [vmem:[#allocation12 + $0x2c] ss:$16 sps:$4 sm:$0xff]   ;;  %v497_v38 = vld [vmem:[#allocation12 + $0x24] ss:$16 sps:$4 sm:$0xff]   ;;  %v494_v39 = vld [vmem:[#allocation12 + $0x28] ss:$16 sps:$4 sm:$0xff]  }
  0x84   :  { %327 = vmatpush1.bf16.msra.mxu1 %v493_v36  ;;  %v499_v40 = vld [vmem:[#allocation12 + $0x20] ss:$16 sps:$4 sm:$0xff]   ;;  %v707_v41 = vmov 0   ;;  %v445_v50 = vld [vmem:[#allocation9] ss:$0 sm:$0xff]  ;;  %v263_v61 = vshrl.u32 %v262_v60, 7 }
  0x85   :  { %328 = vmatprep.subr.bf16.mxu1 %v497_v38  ;;  %358 = vmatprep.mubr.bf16.mxu1 %v707_v41  ;;  %v446_v54 = vld [vmem:[#allocation11] ss:$0 sm:$0xff]  ;;  %v260_v0 = vld [vmem:[#allocation14] sm:$0xf]  ;;  %s708_s6 = smov [#allocation15]  }
  0x86   :  { %463 = vmatpush3.bf16.msra.mxu0 %v486_v2  ;;  %v264_v62 = vsub.s32 0, %v263_v61  ;;  %v272_v63 = vsub.s32 2, %v263_v61  ;;  %v268_v1 = vsub.s32 1, %v263_v61  ;;  %v276_v2 = vsub.s32 3, %v263_v61  ;;  %s425_s27 = sshll.u32 %s708_s6, 4  ;;  %s426_s27 = int_to_ptr.vmem [resolvable:$true] %s425_s27 }
  0x87   :  { %369 = vmatprep.subr.bf16.mxu0 %v490_v33  ;;  %s662_s17 = scalar_lea.vmem %s426_s27, 1024  ;;  %p667_p1 = scmp.lt.s32.totalorder %s426_s27, %s426_s27 }
  0x88   :  { %329 = vmatpush1.bf16.msra.mxu1 %v499_v40  ;;  %p663_p0 = scmp.ne.s32.totalorder %s426_s27, %s662_s17  ;;  %p668_p2 = scmp.lt.s32.totalorder %s662_s17, %s662_s17 }
  0x89   :  { %465 = vmatmul.mubr.msk.bf16.vlgmr.msra.gmra.mrb[0].mxu0 %vm149_vm1, %v487_v3  ;;  %v265_v3 = vrot.slane %v260_v0, %v264_v62 }
  0x8a   :  { %370 = vmatpush1.bf16.msra.mxu0 %v488_v35  ;;  %401 = vmatprep.mubr.bf16.mxu0 %v707_v41  ;;  %p669_p3 = por %p668_p2, %p667_p1 }
  0x8b   :  { %371 = vmatprep.subr.bf16.mxu0 %v496_v37 }
  0x8c   :  { %p670_p4 = pnand %p669_p3, %p663_p0 }
  0x8e   :  { %372 = vmatpush1.bf16.msra.mxu0 %v494_v39 }
 0x15c   :  { %v187_v5 = vpop.f32.mrb[0].mxu0 }
 0x15d   :  { %v188_v6 = vadd.f32 %v440_v4, %v187_v5  ;;  %v466_v7 = vpop.f32.mrb[1].mxu0  ;;  %v269_v5 = vrot.slane %v260_v0, %v268_v1 }
 0x15e   :  { %v190_v8 = vpop.f32.mrb[2].mxu0 }
 0x15f   :  { %v196_v9 = vmul.f32 0.70710677, %v188_v6  ;;  %v191_v10 = vadd.f32 %v440_v4, %v190_v8  ;;  %v467_v11 = vpop.f32.mrb[3].mxu0  ;;  %v194_v14 = vmul.f32 0.5, %v188_v6  ;;  %v273_v4 = vrot.slane %v260_v0, %v272_v63 }
 0x160   :  { %v277_v6 = vrot.slane %v260_v0, %v276_v2 }
 0x161   :  { %500 = verf.f32 %v196_v9  ;;  %v197_v12 = vmul.f32 0.70710677, %v191_v10  ;;  %v195_v17 = vmul.f32 0.5, %v191_v10 }
 0x163   :  { %502 = verf.f32 %v197_v12 }
 0x16b   :  { %v501_v13 = vpop.eup %500 }
 0x16c   :  { %v200_v15 = vadd.f32 1.0, %v501_v13 }
 0x16d   :  { %v503_v16 = vpop.eup %502 }
 0x16e   :  { %v202_v18 = vmul.f32 %v200_v15, %v194_v14  ;;  %v201_v19 = vadd.f32 1.0, %v503_v16 }
 0x170   :  { %v204_v20 = vsel %vm149_vm1, %v202_v18, 0.0  ;;  %v203_v21 = vmul.f32 %v201_v19, %v195_v17 }
 0x171   :  { %205 = vadd.xlane.f32.xlu0 %v204_v20 }
 0x172   :  { %v207_v22 = vsel %vm149_vm1, %v203_v21, 0.0 }
 0x175   :  { %208 = vadd.xlane.f32.xlu0 %v207_v22 }
 0x1fe   :  { %v206_v23 = vpop.xlane.xlu0 %205 }
 0x1ff   :  { %v211_v24 = vmul.f32 0.03125, %v206_v23 }
 0x201   :  { %v213_v25 = vsub.f32 %v202_v18, %v211_v24 }
 0x202   :  { %v209_v26 = vpop.xlane.xlu0 %208 }
 0x203   :  { %v212_v27 = vmul.f32 0.03125, %v209_v26  ;;  %v215_v28 = vmul.f32 %v213_v25, %v213_v25 }
 0x205   :  { %v214_v29 = vsub.f32 %v203_v21, %v212_v27  ;;  %v217_v30 = vsel %vm149_vm1, %v215_v28, 0.0 }
 0x206   :  { %218 = vadd.xlane.f32.xlu1 %v217_v30 }
 0x207   :  { %v216_v31 = vmul.f32 %v214_v29, %v214_v29 }
 0x209   :  { %v220_v32 = vsel %vm149_vm1, %v216_v31, 0.0 }
 0x20a   :  { %221 = vadd.xlane.f32.xlu1 %v220_v32 }
 0x293   :  { %v219_v42 = vpop.xlane.xlu1 %218 }
 0x294   :  { %v223_v43 = vmul.f32 0.03125, %v219_v42 }
 0x296   :  { %v225_v44 = vadd.f32 1e-05, %v223_v43 }
 0x297   :  { %v222_v45 = vpop.xlane.xlu1 %221 }
 0x298   :  { %504 = vrsqrt.f32 %v225_v44  ;;  %v224_v46 = vmul.f32 0.03125, %v222_v45 }
 0x29a   :  { %v226_v47 = vadd.f32 1e-05, %v224_v46 }
 0x29c   :  { %506 = vrsqrt.f32 %v226_v47 }
 0x2a2   :  { %v505_v48 = vpop.eup %504 }
 0x2a3   :  { %v229_v49 = vmul.f32 %v505_v48, %v213_v25 }
 0x2a5   :  { %v238_v52 = vmul.f32 %v445_v50, %v229_v49 }
 0x2a6   :  { %v507_v51 = vpop.eup %506 }
 0x2a7   :  { %v230_v53 = vmul.f32 %v507_v51, %v214_v29  ;;  %v247_v56 = vadd.f32 %v446_v54, %v238_v52 }
 0x2a9   :  { %v239_v55 = vmul.f32 %v445_v50, %v230_v53 }
 0x2ab   :  { %v248_v57 = vadd.f32 %v446_v54, %v239_v55 }
 0x2ad   :  { %v249_v58 = vpack.c.bf16 %v248_v57, %v247_v56 }
 0x2af   :  { %250 = vst.msk [vmem:[#allocation2] sm:$0xff] %vm149_vm1, %v249_v58 }
 0x2b6   :  { %v251_v59 = vld [vmem:[#allocation2] sm:$0xff] }
 0x2b7   :  { %455 = vmatmul.mubr.msk.bf16.vlgmr.msra.gmra.mrb[0].mxu1 %vm149_vm1, %v251_v59  ;;  %456 = vmatmul.mubr.msk.bf16.vlgmr.msra.gmra.mrb[4].mxu0 %vm149_vm1, %v251_v59 }
 0x38a   :  { %v360_v7 = vpop.f32.mrb[0].mxu1  ;;  %v403_v8 = vpop.f32.mrb[4].mxu0 }
 0x38b   :  { %v361_v9 = vadd.f32 %v360_v7, %v265_v3  ;;  %v404_v10 = vadd.f32 %v403_v8, %v273_v4  ;;  %v362_v11 = vpop.f32.mrb[1].mxu1  ;;  %v405_v12 = vpop.f32.mrb[5].mxu0 }
 0x38c   :  { %v363_v13 = vadd.f32 %v362_v11, %v269_v5  ;;  %v406_v14 = vadd.f32 %v405_v12, %v277_v6  ;;  %v364_v15 = vpop.f32.mrb[2].mxu1  ;;  %v407_v16 = vpop.f32.mrb[6].mxu0 }
 0x38d   :  { %412 = vst [vmem:[#allocation15] sm:$0xff] %v361_v9  ;;  %414 = vst [vmem:[#allocation15 + $0x10] sm:$0xff] %v404_v10  ;;  %v365_v17 = vadd.f32 %v364_v15, %v265_v3  ;;  %v408_v18 = vadd.f32 %v407_v16, %v273_v4  ;;  %v366_v19 = vpop.f32.mrb[3].mxu1  ;;  %v409_v20 = vpop.f32.mrb[7].mxu0 }
 0x38e   :  { %413 = vst [vmem:[#allocation15 + $0x8] sm:$0xff] %v363_v13  ;;  %415 = vst [vmem:[#allocation15 + $0x18] sm:$0xff] %v406_v14  ;;  %v367_v21 = vadd.f32 %v366_v19, %v269_v5  ;;  %v410_v22 = vadd.f32 %v409_v20, %v277_v6 }
 0x38f   :  { %416 = vst [vmem:[#allocation15 + $0x20] sm:$0xff] %v365_v17  ;;  %418 = vst [vmem:[#allocation15 + $0x30] sm:$0xff] %v408_v18 }
 0x390   :  { %417 = vst [vmem:[#allocation15 + $0x28] sm:$0xff] %v367_v21  ;;  %419 = vst [vmem:[#allocation15 + $0x38] sm:$0xff] %v410_v22 }
 0x391   :  { %673 = shalt.err (!%p670_p4)
}
 0x392   :  { %s674_s14 = scalar_lea.hbm %s876_s7, 1024 }
 0x393   :  { %p675_p5 = scmp.ne.s32.totalorder %s876_s7, %s674_s14  ;;  %p678_p6 = scmp.lt.u32.totalorder %s674_s14, %s876_s7 }
 0x395   :  { %p680_p7 = pnand %p678_p6, %p675_p5 }
 0x397   :  { %683 = shalt.err (!%p680_p7)
}
 0x398   :  { %s709_s23 = smov 512   ;;  %s710_s24 = smov 32  }
 0x399   :  { %431 = dma.vmem_to_hbm [thread:$0]  %s426_s27, 1024, %s876_s7, [#allocation5], %s709_s23, %s709_s23, %s710_s24  }
 0x39a   :  { %692 = dma.done.wait [#allocation5], 1024  }
 0x39b   :  { %693 = vsyncadd [#allocation5], 4294966272 }
 0x39c   :  { %435 = vsyncpa [#allocation4], 1 }
 0x39d   :  { %436 = vsyncpa [#allocation7], 1 }
 0x39e   :  { %437 = vsyncpa [#allocation10], 1 }
 0x39f   :  { %438 = vsyncpa [#allocation13], 1 }
 0x3a0   :  { %439 = vsyncpa [#allocation5], 1 }

</bundles_post_ra>
